<compile_context>
chip_gen: v7x
topology: tpu7x:2x2x1
jax: 0.10.0
libtpu: 0.0.40
codegen_flags: <defaults>
</compile_context>

<pallas_src>
import jax
import jax.numpy as jnp
from jax.experimental import pallas as pl
from jax.experimental.pallas import tpu as pltpu


# ----------------------------------------------------------------------------
# Pallas kernel: identity copy via concurrent HBM->HBM DMAs.
# ----------------------------------------------------------------------------
_TARGET_CHUNK_BYTES = 4 * 1024 * 1024  # ~4 MiB per DMA chunk
_MAX_DMA_CHUNKS = 8                    # max concurrent DMAs per call


def _make_chunked_dma_copy_kernel(chunks):
    """Build a kernel copying `chunks` (static (start, size) pairs along the
    leading axis) from the input HBM ref to the output HBM ref."""

    def kernel(x_ref, o_ref, sems):
        copies = []
        # Issue all chunk DMAs first (concurrent), then wait on all of them.
        for idx, (start, size) in enumerate(chunks):
            cp = pltpu.make_async_copy(
                x_ref.at[pl.ds(start, size)],
                o_ref.at[pl.ds(start, size)],
                sems.at[idx],
            )
            cp.start()
            copies.append(cp)
        for cp in copies:
            cp.wait()

    return kernel


def _chunk_leading_axis(rows, row_bytes):
    """Split `rows` into <= _MAX_DMA_CHUNKS contiguous, statically sized
    chunks of roughly _TARGET_CHUNK_BYTES each."""
    total_bytes = rows * row_bytes
    n_chunks = -(-total_bytes // _TARGET_CHUNK_BYTES)  # ceil div
    n_chunks = max(1, min(_MAX_DMA_CHUNKS, int(n_chunks)))
    n_chunks = min(n_chunks, rows)

    base = rows // n_chunks
    rem = rows % n_chunks
    chunks = []
    start = 0
    for i in range(n_chunks):
        size = base + (1 if i < rem else 0)
        chunks.append((start, size))
        start += size
    return tuple(chunks)


def identity_image_op(image):
    """Identity transform of an image batch, executed on-TPU via Pallas.

    The array is viewed as a lane-dense (rows, 128) slab when the element
    count divides 128 (common case), or as a flat 1-D buffer otherwise (no
    padding copy either way), and copied HBM->HBM with a few concurrent DMAs.
    """
    image = jnp.asarray(image)
    orig_shape = image.shape
    n = int(image.size)
    if n == 0:
        return image

    dtype = image.dtype
    itemsize = dtype.itemsize

    # Lane-dense 2-D view when possible; flat 1-D view otherwise.  The DMA
    # engine copies bytes, so neither view needs padding or masking.
    if n % 128 == 0:
        view = image.reshape(n // 128, 128)
        row_bytes = 128 * itemsize
    else:
        view = image.reshape(n)
        row_bytes = itemsize

    rows = view.shape[0]
    chunks = _chunk_leading_axis(rows, row_bytes)

    out = pl.pallas_call(
        _make_chunked_dma_copy_kernel(chunks),
        out_shape=jax.ShapeDtypeStruct(view.shape, dtype),
        in_specs=[pl.BlockSpec(memory_space=pl.ANY)],
        out_specs=pl.BlockSpec(memory_space=pl.ANY),
        scratch_shapes=[pltpu.SemaphoreType.DMA((len(chunks),))],
        cost_estimate=pl.CostEstimate(
            flops=0, transcendentals=0, bytes_accessed=2 * n * itemsize
        ),
    )(view)

    return out.reshape(orig_shape)


# ----------------------------------------------------------------------------
# ModelABC ported: same property/setter logic; compute routed through Pallas.
# ----------------------------------------------------------------------------
class ModelABC:
    """JAX/Pallas port of tiatoolbox ModelABC.

    `forward` and `infer_batch` are abstract in the original; `preproc` and
    `postproc` are identity transforms, implemented with the Pallas HBM->HBM
    DMA copy kernel when invoked on device arrays.
    """

    def __init__(self):
        self._postproc = self.postproc
        self._preproc = self.preproc

    # TODO(synk): `forward` is abstract in the original module (no concrete
    # layers are defined); subclasses must supply it.  Kept abstract here.
    def forward(self, *args, **kwargs):
        raise NotImplementedError

    # TODO(synk): `infer_batch` is abstract in the original module.
    @staticmethod
    def infer_batch(model, batch_data, on_gpu):
        raise NotImplementedError

    @staticmethod
    def preproc(image):
        """Pre-processing: identity, executed as a Pallas TPU DMA copy."""
        return identity_image_op(image)

    @staticmethod
    def postproc(image):
        """Post-processing: identity, executed as a Pallas TPU DMA copy."""
        return identity_image_op(image)

    @property
    def preproc_func(self):
        return self._preproc

    @preproc_func.setter
    def preproc_func(self, func):
        if func is None:
            self._preproc = self.preproc
        elif callable(func):
            self._preproc = func
        else:
            raise ValueError(f"{func} is not callable!")

    @property
    def postproc_func(self):
        return self._postproc

    @postproc_func.setter
    def postproc_func(self, func):
        if func is None:
            self._postproc = self.postproc
        elif callable(func):
            self._postproc = func
        else:
            raise ValueError(f"{func} is not callable!")


class _ConcreteModel(ModelABC):
    """Minimal concrete subclass used to exercise the ABC's plumbing."""

    def forward(self, x):
        # No layers are defined in ModelABC.__init__; the only concrete
        # semantics available are the identity pre/post transforms.
        return identity_image_op(x)

    @staticmethod
    def infer_batch(model, batch_data, on_gpu):
        del on_gpu  # device placement handled by JAX

        # Biggest win (per perf review): when pre/post are the default
        # identities and forward is the identity pass, the whole pipeline is
        # a no-op -> return the batch untouched.  Zero HBM traffic, zero
        # kernel launches, and identical semantics to the PyTorch module
        # (whose identity preproc/postproc return `image` itself).
        default_pre = model.preproc_func is type(model).preproc
        default_post = model.postproc_func is type(model).postproc
        default_fwd = type(model).forward is _ConcreteModel.forward
        if default_pre and default_post and default_fwd:
            return batch_data

        x = model.preproc_func(batch_data)
        y = model.forward(x)
        return model.postproc_func(y)


if __name__ == "__main__":
    key = jax.random.PRNGKey(0)
    # NCHW batch, PyTorch-style: batch=2, channels=4, spatial=16x16.
    x = jax.random.normal(key, (2, 4, 16, 16), dtype=jnp.float32)

    model = _ConcreteModel()
    # Exercise the property setters (default back to identity preproc/postproc).
    model.preproc_func = None
    model.postproc_func = None

    # 1) Run the Pallas identity kernel directly (preproc semantics on-TPU).
    y = jax.block_until_ready(model.preproc_func(x))
    assert y.shape == x.shape and y.dtype == x.dtype
    assert bool(jnp.array_equal(y, x))

    # 2) Full infer_batch: the all-identity pipeline short-circuits (no copy).
    out = jax.block_until_ready(_ConcreteModel.infer_batch(model, x, on_gpu=False))
    assert out.shape == x.shape and out.dtype == x.dtype
    assert bool(jnp.array_equal(out, x))

    print("KERNEL_OK")
</pallas_src>

<mosaic_0001>
module attributes {stable_mosaic.version = 11 : i64} {
  func.func @kernel(%arg0: memref<16x128xf32, #tpu.memory_space<any>>, %arg1: memref<16x128xf32, #tpu.memory_space<any>>, %arg2: memref<1x!tpu.dma_semaphore, #tpu.memory_space<semaphore_mem>>) attributes {dimension_semantics = [], scalar_prefetch = 0 : i64, scratch_operands = 1 : i64, tpu.core_type = #tpu.core_type<tc>} {
    %c0_i32 = arith.constant 0 : i32
    %c0_i32_0 = arith.constant 0 : i32
    %c0_i32_1 = arith.constant 0 : i32
    %0 = tpu.memref_slice %arg0[%c0_i32_0, %c0_i32_1] : memref<16x128xf32, #tpu.memory_space<any>> -> memref<16x128xf32, #tpu.memory_space<any>>
    %c0_i32_2 = arith.constant 0 : i32
    %c0_i32_3 = arith.constant 0 : i32
    %1 = tpu.memref_slice %arg1[%c0_i32_2, %c0_i32_3] : memref<16x128xf32, #tpu.memory_space<any>> -> memref<16x128xf32, #tpu.memory_space<any>>
    %2 = tpu.memref_slice %arg2[%c0_i32] : memref<1x!tpu.dma_semaphore, #tpu.memory_space<semaphore_mem>> -> memref<1x!tpu.dma_semaphore, #tpu.memory_space<semaphore_mem>>
    %3 = tpu.memref_squeeze %2 : memref<1x!tpu.dma_semaphore, #tpu.memory_space<semaphore_mem>> -> memref<!tpu.dma_semaphore, #tpu.memory_space<semaphore_mem>>
    tpu.enqueue_dma source(%0 : memref<16x128xf32, #tpu.memory_space<any>>) target(%1 : memref<16x128xf32, #tpu.memory_space<any>>) target_semaphore(%3 : memref<!tpu.dma_semaphore, #tpu.memory_space<semaphore_mem>>)
    %c0_i32_4 = arith.constant 0 : i32
    %c0_i32_5 = arith.constant 0 : i32
    %c0_i32_6 = arith.constant 0 : i32
    %4 = tpu.memref_slice %arg0[%c0_i32_5, %c0_i32_6] : memref<16x128xf32, #tpu.memory_space<any>> -> memref<16x128xf32, #tpu.memory_space<any>>
    %c0_i32_7 = arith.constant 0 : i32
    %c0_i32_8 = arith.constant 0 : i32
    %5 = tpu.memref_slice %arg1[%c0_i32_7, %c0_i32_8] : memref<16x128xf32, #tpu.memory_space<any>> -> memref<16x128xf32, #tpu.memory_space<any>>
    %6 = tpu.memref_slice %arg2[%c0_i32_4] : memref<1x!tpu.dma_semaphore, #tpu.memory_space<semaphore_mem>> -> memref<1x!tpu.dma_semaphore, #tpu.memory_space<semaphore_mem>>
    %7 = tpu.memref_squeeze %6 : memref<1x!tpu.dma_semaphore, #tpu.memory_space<semaphore_mem>> -> memref<!tpu.dma_semaphore, #tpu.memory_space<semaphore_mem>>
    tpu.wait_dma2 semaphore(%7 : memref<!tpu.dma_semaphore, #tpu.memory_space<semaphore_mem>>) src(%4 : memref<16x128xf32, #tpu.memory_space<any>>) dst(%5 : memref<16x128xf32, #tpu.memory_space<any>>)
    return
  }
}

</mosaic_0001>

<bundles_post_ra>
// kernel: tpu_custom_call.1
= control target key start
LH: loop header
LB: loop body
LE: loop exit
PB: predicated region body
PF: predicated region fallthrough
CT: control target
= control target key end

     0   :  { %s34_s6 = smov [#allocation2]   ;;  %s35_s7 = smov [#allocation3]   ;;  %s53_s0 = inlined_call_operand.hbm [shape: f32[16,128], index: 0, kind: input, shape index: {}]   ;;  %s54_s1 = inlined_call_operand.hbm [shape: f32[16,128], index: 1, kind: output, shape index: {}]  }
   0x1   :  { %s36_s8 = smov 0  }
   0x2   :  { %18 = dma.general %s53_s0, 256, %s54_s1, %s34_s6, %s35_s7, [#allocation4], %s36_s8, 0  }
   0x3   :  { %32 = dma.done.wait [#allocation2], 256 }
   0x4   :  { %33 = vsyncadd [#allocation2], 4294967040 }
   0x5   :  { %22 = vsyncmov [#allocation2] }
   0x8   :  { %s23_s13 = vpop.sfrf %22 }
   0x9   :  { %p28_p0 = scmp.ne.s32.totalorder %s23_s13, 0 }
   0xb   :  { %27 = shalt.err (%p28_p0)  }

</bundles_post_ra>
